<compile_context>
chip_gen: v7x
topology: tpu7x:2x2x1
jax: 0.10.0
libtpu: 0.0.40
codegen_flags: <defaults>
</compile_context>

<pallas_src>
import numpy as np
import jax
import jax.numpy as jnp
from jax.experimental import pallas as pl
from jax.experimental.pallas import tpu as pltpu

_LANE = 128


def _round_up(x, m):
    return ((x + m - 1) // m) * m


# --------------------------------------------------------------------------
# Kernel: fused (concat + masked-MLP + column-prune) forward for one batch tile
# --------------------------------------------------------------------------
def _made_kernel(ctx_ref, x_ref, w0c_ref, w0x_ref, b0_ref, *rest):
    # rest = (w1, b1, ..., wL, bL, out_ref)
    out_ref = rest[-1]
    tail = rest[:-1]
    n_tail = len(tail) // 2

    # ---- layer 0: fused torch.cat((context, x), 1) as two partial matmuls ----
    # f32 weights here: the contraction dims are tiny (cond_in / nin), so the
    # extra MXU passes are negligible and the layouts stay simple & exact.
    h = jnp.dot(ctx_ref[...].astype(jnp.float32), w0c_ref[...],
                preferred_element_type=jnp.float32)
    h = h + jnp.dot(x_ref[...].astype(jnp.float32), w0x_ref[...],
                    preferred_element_type=jnp.float32)
    h = h + b0_ref[...]
    if n_tail > 0:
        h = jnp.maximum(h, 0.0)

    # ---- remaining layers: bf16 MXU matmuls, f32 accumulate / bias / ReLU ----
    for i in range(n_tail):
        w_ref = tail[2 * i]
        b_ref = tail[2 * i + 1]
        h = jnp.dot(h.astype(w_ref.dtype), w_ref[...],
                    preferred_element_type=jnp.float32)
        h = h + b_ref[...]
        if i < n_tail - 1:
            h = jnp.maximum(h, 0.0)

    # Drop lane padding; store in the (narrow) output dtype -- the padded/pruned
    # columns never leave VMEM, so no post-kernel slice is needed.
    out_ref[...] = h[:, : out_ref.shape[1]].astype(out_ref.dtype)


def _pick_batch_tile(B, block_b):
    block_b = max(16, _round_up(block_b, 16))
    if B > block_b:
        return block_b                                   # big, sublane-dense tiles
    if B >= 32:
        # >=2 grid steps so the "parallel" axis can shard across v7x's 2 TCs
        return min(_round_up(pl.cdiv(B, 2), 16), B)
    return B                                             # tiny batch: one full block


def made_forward_pallas(context, x, layer0, tail_params, out_dim, *,
                        block_b=512, out_dtype=jnp.bfloat16):
    """context: (B, cond_in), x: (B, nin) -- passed raw (no concat/pad/cast).

    layer0      = (w0_ctx (cond_in, H0p) f32, w0_x (nin, H0p) f32, b0 (1, H0p) f32)
    tail_params = [(w (Kp, Np) bf16, b (1, Np) f32), ...]
    Returns (B, out_dim) in out_dtype.
    """
    B = x.shape[0]
    cond_in = context.shape[1]
    nin = x.shape[1]
    w0c, w0x, b0 = layer0

    tb = _pick_batch_tile(B, block_b)
    nb = pl.cdiv(B, tb)          # ragged last tile: OOB output rows are dropped

    flat_args = [context, x, w0c, w0x, b0]
    # Constant index_maps keep every weight / bias VMEM-resident across batch tiles.
    in_specs = [
        pl.BlockSpec((tb, cond_in), lambda i: (i, 0)),
        pl.BlockSpec((tb, nin), lambda i: (i, 0)),
        pl.BlockSpec(w0c.shape, lambda i: (0, 0)),
        pl.BlockSpec(w0x.shape, lambda i: (0, 0)),
        pl.BlockSpec(b0.shape, lambda i: (0, 0)),
    ]
    for w, b in tail_params:
        flat_args += [w, b]
        in_specs += [pl.BlockSpec(w.shape, lambda i: (0, 0)),
                     pl.BlockSpec(b.shape, lambda i: (0, 0))]
    out_spec = pl.BlockSpec((tb, out_dim), lambda i: (i, 0))

    # Advisory cost estimate (helps XLA overlap surrounding ops with the kernel).
    flops = 2 * B * (cond_in * w0c.shape[1] + nin * w0x.shape[1])
    for w, _ in tail_params:
        flops += 2 * B * w.shape[0] * w.shape[1]
    out_itemsize = np.dtype(out_dtype).itemsize
    bytes_accessed = sum(int(a.size) * a.dtype.itemsize for a in flat_args)
    bytes_accessed += B * out_dim * out_itemsize

    # VMEM budget: default double-buffering on every block, plus headroom.
    weight_bytes = sum(int(a.size) * a.dtype.itemsize for a in flat_args[2:])
    act_block_bytes = tb * (cond_in + nin) * 4
    out_block_bytes = tb * out_dim * out_itemsize
    vmem_limit = 2 * (weight_bytes + act_block_bytes + out_block_bytes) + (8 << 20)
    vmem_limit = int(min(max(vmem_limit, 32 << 20), 100 << 20))
    # NOTE: for very large MADEs (resident bf16 weights approaching VMEM/2 on
    # v7x's 64 MiB per TC), stream weight chunks over an extra K/N grid axis
    # (or pltpu.emit_pipeline) instead of keeping every layer resident, and
    # single-buffer the constant weight blocks.

    return pl.pallas_call(
        _made_kernel,
        out_shape=jax.ShapeDtypeStruct((B, out_dim), out_dtype),
        grid=(nb,),
        in_specs=in_specs,
        out_specs=out_spec,
        compiler_params=pltpu.CompilerParams(
            dimension_semantics=("parallel",),          # megacore-shard on v7x
            vmem_limit_bytes=vmem_limit),
        cost_estimate=pl.CostEstimate(
            flops=int(flops), transcendentals=0,
            bytes_accessed=int(bytes_accessed)),
    )(*flat_args)


# --------------------------------------------------------------------------
# ConditionnalMADE module (synthetic, deterministic init)
# --------------------------------------------------------------------------
class ConditionnalMADEPallas:
    # TODO(synk): only forward() is implemented; computeLL / invert (iterative
    # per-dimension inversion) are host-side loops around forward and were not
    # translated to Pallas.
    def __init__(self, nin, cond_in, hidden_sizes, nout, seed=0,
                 block_b=512, out_dtype=jnp.bfloat16):
        self.nin = nin                      # non-conditioning inputs
        self.cond_in = cond_in
        self.nin_total = nin + cond_in      # MADE's "nin"
        self.nout = nout
        self.hidden_sizes = list(hidden_sizes)
        self.block_b = block_b
        self.out_dtype = out_dtype

        # ---- autoregressive mask construction (MADE.update_masks) ----
        rng = np.random.RandomState(42)
        L = len(self.hidden_sizes)
        m = {-1: np.arange(self.nin_total)}
        for l in range(L):
            m[l] = rng.randint(m[l - 1].min(), self.nin_total - 1,
                               size=self.hidden_sizes[l])
        masks = [(m[l - 1][:, None] <= m[l][None, :]) for l in range(L)]
        masks.append(m[L - 1][:, None] < m[-1][None, :])
        masks[-1] = np.concatenate([masks[-1]] * nout, axis=1)
        masks = [mk.astype(np.float32) for mk in masks]          # (in, out)

        # ---- deterministic parameter init (nn.Linear shapes), pre-masked ----
        hs = [self.nin_total] + self.hidden_sizes + [nout * self.nin_total]
        key = jax.random.PRNGKey(seed)
        raw = []
        for (h0, h1), mask in zip(zip(hs, hs[1:]), masks):
            key, kw, kb = jax.random.split(key, 3)
            bound = 1.0 / np.sqrt(h0)
            w = jax.random.uniform(kw, (h1, h0), jnp.float32, -bound, bound)
            b = jax.random.uniform(kb, (h1,), jnp.float32, -bound, bound)
            # MaskedLinear: F.linear(x, mask * W, b) == x @ (W.T * mask)
            raw.append((np.asarray(w).T * mask, np.asarray(b)))  # (in, out)

        # ---- prune output columns forward() would discard (exact fusion of
        #      reshape(B, nout, nin_total)[:, :, cond_in:]) ----
        w_last, b_last = raw[-1]
        keep = (np.arange(nout * self.nin_total) % self.nin_total) >= cond_in
        raw[-1] = (w_last[:, keep], b_last[keep])
        self.out_dim = nout * nin

        # unpadded f32 copies = module-semantics reference
        self.params_f32 = [(jnp.asarray(w, jnp.float32),
                            jnp.asarray(b, jnp.float32).reshape(1, -1))
                           for w, b in raw]

        # ---- pad every layer-OUTPUT dim to a lane multiple (zeros: exact).
        #      Layer 0's input dim stays unpadded and is row-split so the kernel
        #      consumes raw `context` / `x` with no wrapper concat/pad/cast. ----
        out_dims = self.hidden_sizes + [self.out_dim]
        pdims = [_round_up(d, _LANE) for d in out_dims]

        w0, b0 = raw[0]
        w0p = np.zeros((self.nin_total, pdims[0]), np.float32)
        b0p = np.zeros((1, pdims[0]), np.float32)
        w0p[:, : w0.shape[1]] = w0
        b0p[0, : b0.shape[0]] = b0
        self.layer0 = (jnp.asarray(w0p[:cond_in], jnp.float32),   # rows for context
                       jnp.asarray(w0p[cond_in:], jnp.float32),   # rows for x
                       jnp.asarray(b0p, jnp.float32))

        self.tail_params = []   # bf16 weights (MXU rate, half VMEM), f32 biases
        for i, (w, b) in enumerate(raw[1:], start=1):
            wp = np.zeros((pdims[i - 1], pdims[i]), np.float32)
            bp = np.zeros((1, pdims[i]), np.float32)
            wp[: w.shape[0], : w.shape[1]] = w
            bp[0, : b.shape[0]] = b
            self.tail_params.append((jnp.asarray(wp, jnp.bfloat16),
                                     jnp.asarray(bp, jnp.float32)))

    # ---------------- forward (Pallas hot path) ----------------
    def forward(self, x, context):
        """x: (B, nin), context: (B, cond_in)  ->  (B, nout * nin) in out_dtype."""
        return made_forward_pallas(context, x, self.layer0, self.tail_params,
                                   self.out_dim, block_b=self.block_b,
                                   out_dtype=self.out_dtype)

    # ---------------- references ----------------
    def forward_ref_kernel_precision(self, x, context):
        """Pure-JAX mirror of the kernel's precision recipe (tight check)."""
        w0c, w0x, b0 = self.layer0
        h = (jnp.dot(context.astype(jnp.float32), w0c,
                     preferred_element_type=jnp.float32)
             + jnp.dot(x.astype(jnp.float32), w0x,
                       preferred_element_type=jnp.float32) + b0)
        n = len(self.tail_params)
        if n > 0:
            h = jnp.maximum(h, 0.0)
        for i, (w, b) in enumerate(self.tail_params):
            h = jnp.dot(h.astype(jnp.bfloat16), w,
                        preferred_element_type=jnp.float32) + b
            if i < n - 1:
                h = jnp.maximum(h, 0.0)
        return h[:, : self.out_dim].astype(self.out_dtype)

    def forward_ref_f32(self, x, context):
        """Full-f32 reference of the original module semantics."""
        h = jnp.concatenate([context, x], axis=1).astype(jnp.float32)
        n = len(self.params_f32)
        for i, (w, b) in enumerate(self.params_f32):
            h = h @ w + b
            if i < n - 1:
                h = jnp.maximum(h, 0.0)
        return h            # output layer already column-pruned at init


# --------------------------------------------------------------------------
if __name__ == "__main__":
    # small shapes consistent with the module's forward
    nin, cond_in, nout = 4, 3, 3
    hidden_sizes = [32, 32]
    B = 8

    model = ConditionnalMADEPallas(nin, cond_in, hidden_sizes, nout, seed=0)

    key = jax.random.PRNGKey(0)
    kx, kc = jax.random.split(key)
    x = jax.random.normal(kx, (B, nin), jnp.float32)
    context = jax.random.normal(kc, (B, cond_in), jnp.float32)

    out = jax.block_until_ready(model.forward(x, context))
    assert out.shape == (B, nout * nin), out.shape

    out_f = np.asarray(out.astype(jnp.float32))

    # kernel vs same-precision JAX reference (tight, bf16-ulp level)
    ref_k = np.asarray(model.forward_ref_kernel_precision(x, context)
                       .astype(jnp.float32))
    np.testing.assert_allclose(out_f, ref_k, rtol=2e-2, atol=2e-2)

    # kernel vs full-f32 module semantics (bf16 weights/activations/output)
    ref_f32 = np.asarray(model.forward_ref_f32(x, context))
    np.testing.assert_allclose(out_f, ref_f32, rtol=5e-2, atol=5e-2)

    print("KERNEL_OK")
</pallas_src>

<mosaic_0001>
module attributes {stable_mosaic.version = 11 : i64} {
  func.func @_made_kernel(%arg0: i32, %arg1: memref<8x3xf32, #tpu.memory_space<vmem>>, %arg2: memref<8x4xf32, #tpu.memory_space<vmem>>, %arg3: memref<3x128xf32, #tpu.memory_space<vmem>>, %arg4: memref<4x128xf32, #tpu.memory_space<vmem>>, %arg5: memref<1x128xf32, #tpu.memory_space<vmem>>, %arg6: memref<128x128xbf16, #tpu.memory_space<vmem>>, %arg7: memref<1x128xf32, #tpu.memory_space<vmem>>, %arg8: memref<128x128xbf16, #tpu.memory_space<vmem>>, %arg9: memref<1x128xf32, #tpu.memory_space<vmem>>, %arg10: memref<8x12xbf16, #tpu.memory_space<vmem>>) attributes {dimension_semantics = [#tpu.dimension_semantics<parallel>], iteration_bounds = array<i64: 1>, scalar_prefetch = 0 : i64, scratch_operands = 0 : i64, tpu.core_type = #tpu.core_type<tc>, window_params = [{transform_indices = @transform_0, window_bounds = array<i64: 8, 3>}, {transform_indices = @transform_1, window_bounds = array<i64: 8, 4>}, {pipeline_mode = #tpu.pipeline_mode<synchronous>, transform_indices = @transform_2, window_bounds = array<i64: 3, 128>}, {pipeline_mode = #tpu.pipeline_mode<synchronous>, transform_indices = @transform_3, window_bounds = array<i64: 4, 128>}, {pipeline_mode = #tpu.pipeline_mode<synchronous>, transform_indices = @transform_4, window_bounds = array<i64: 1, 128>}, {pipeline_mode = #tpu.pipeline_mode<synchronous>, transform_indices = @transform_5, window_bounds = array<i64: 128, 128>}, {pipeline_mode = #tpu.pipeline_mode<synchronous>, transform_indices = @transform_6, window_bounds = array<i64: 1, 128>}, {pipeline_mode = #tpu.pipeline_mode<synchronous>, transform_indices = @transform_7, window_bounds = array<i64: 128, 128>}, {pipeline_mode = #tpu.pipeline_mode<synchronous>, transform_indices = @transform_8, window_bounds = array<i64: 1, 128>}, {transform_indices = @transform_9, window_bounds = array<i64: 8, 12>}]} {
    %c0 = arith.constant 0 : index
    %c0_0 = arith.constant 0 : index
    %0 = vector.load %arg1[%c0, %c0_0] : memref<8x3xf32, #tpu.memory_space<vmem>>, vector<8x3xf32>
    %c0_1 = arith.constant 0 : index
    %c0_2 = arith.constant 0 : index
    %1 = vector.load %arg3[%c0_1, %c0_2] : memref<3x128xf32, #tpu.memory_space<vmem>>, vector<3x128xf32>
    %cst = arith.constant dense<0.000000e+00> : vector<8x128xf32>
    %2 = tpu.matmul %0, %1, %cst {dimension_numbers = #tpu.dot_dimension_numbers<[1], [0], [0], [1], [0, 0, 1, 1], [], []>} : vector<8x3xf32>, vector<3x128xf32>, vector<8x128xf32> -> vector<8x128xf32>
    %c0_3 = arith.constant 0 : index
    %c0_4 = arith.constant 0 : index
    %3 = vector.load %arg2[%c0_3, %c0_4] : memref<8x4xf32, #tpu.memory_space<vmem>>, vector<8x4xf32>
    %c0_5 = arith.constant 0 : index
    %c0_6 = arith.constant 0 : index
    %4 = vector.load %arg4[%c0_5, %c0_6] : memref<4x128xf32, #tpu.memory_space<vmem>>, vector<4x128xf32>
    %cst_7 = arith.constant dense<0.000000e+00> : vector<8x128xf32>
    %5 = tpu.matmul %3, %4, %cst_7 {dimension_numbers = #tpu.dot_dimension_numbers<[1], [0], [0], [1], [0, 0, 1, 1], [], []>} : vector<8x4xf32>, vector<4x128xf32>, vector<8x128xf32> -> vector<8x128xf32>
    %6 = arith.addf %2, %5 : vector<8x128xf32>
    %c0_8 = arith.constant 0 : index
    %c0_9 = arith.constant 0 : index
    %7 = vector.load %arg5[%c0_8, %c0_9] : memref<1x128xf32, #tpu.memory_space<vmem>>, vector<1x128xf32>
    %8 = vector.broadcast %7 : vector<1x128xf32> to vector<8x128xf32>
    %9 = arith.addf %6, %8 : vector<8x128xf32>
    %cst_10 = arith.constant 0.000000e+00 : f32
    %10 = vector.broadcast %cst_10 : f32 to vector<8x128xf32>
    %11 = arith.maximumf %9, %10 : vector<8x128xf32>
    %12 = arith.truncf %11 : vector<8x128xf32> to vector<8x128xbf16>
    %c0_11 = arith.constant 0 : index
    %c0_12 = arith.constant 0 : index
    %13 = vector.load %arg6[%c0_11, %c0_12] : memref<128x128xbf16, #tpu.memory_space<vmem>>, vector<128x128xbf16>
    %cst_13 = arith.constant dense<0.000000e+00> : vector<8x128xf32>
    %14 = tpu.matmul %12, %13, %cst_13 {dimension_numbers = #tpu.dot_dimension_numbers<[1], [0], [0], [1], [0, 0, 1, 1], [], []>} : vector<8x128xbf16>, vector<128x128xbf16>, vector<8x128xf32> -> vector<8x128xf32>
    %c0_14 = arith.constant 0 : index
    %c0_15 = arith.constant 0 : index
    %15 = vector.load %arg7[%c0_14, %c0_15] : memref<1x128xf32, #tpu.memory_space<vmem>>, vector<1x128xf32>
    %16 = vector.broadcast %15 : vector<1x128xf32> to vector<8x128xf32>
    %17 = arith.addf %14, %16 : vector<8x128xf32>
    %cst_16 = arith.constant 0.000000e+00 : f32
    %18 = vector.broadcast %cst_16 : f32 to vector<8x128xf32>
    %19 = arith.maximumf %17, %18 : vector<8x128xf32>
    %20 = arith.truncf %19 : vector<8x128xf32> to vector<8x128xbf16>
    %c0_17 = arith.constant 0 : index
    %c0_18 = arith.constant 0 : index
    %21 = vector.load %arg8[%c0_17, %c0_18] : memref<128x128xbf16, #tpu.memory_space<vmem>>, vector<128x128xbf16>
    %cst_19 = arith.constant dense<0.000000e+00> : vector<8x128xf32>
    %22 = tpu.matmul %20, %21, %cst_19 {dimension_numbers = #tpu.dot_dimension_numbers<[1], [0], [0], [1], [0, 0, 1, 1], [], []>} : vector<8x128xbf16>, vector<128x128xbf16>, vector<8x128xf32> -> vector<8x128xf32>
    %c0_20 = arith.constant 0 : index
    %c0_21 = arith.constant 0 : index
    %23 = vector.load %arg9[%c0_20, %c0_21] : memref<1x128xf32, #tpu.memory_space<vmem>>, vector<1x128xf32>
    %24 = vector.broadcast %23 : vector<1x128xf32> to vector<8x128xf32>
    %25 = arith.addf %22, %24 : vector<8x128xf32>
    %26 = vector.extract_strided_slice %25 {offsets = [0, 0], sizes = [8, 12], strides = [1, 1]} : vector<8x128xf32> to vector<8x12xf32>
    %27 = arith.truncf %26 : vector<8x12xf32> to vector<8x12xbf16>
    %c0_22 = arith.constant 0 : index
    %c0_23 = arith.constant 0 : index
    %28 = vector.load %arg10[%c0_22, %c0_23] : memref<8x12xbf16, #tpu.memory_space<vmem>>, vector<8x12xbf16>
    tpu.vector_store %arg10[%c0_22, %c0_23], %27 {strides = array<i32>} : memref<8x12xbf16, #tpu.memory_space<vmem>>, vector<8x12xbf16>,
    return
  }
  func.func @transform_0(%arg0: i32) -> (i32, i32) {
    %c0_i32 = arith.constant 0 : i32
    %c0_i32_0 = arith.constant 0 : i32
    return %arg0, %c0_i32 : i32, i32
  }
  func.func @transform_1(%arg0: i32) -> (i32, i32) {
    %c0_i32 = arith.constant 0 : i32
    %c0_i32_0 = arith.constant 0 : i32
    return %arg0, %c0_i32 : i32, i32
  }
  func.func @transform_2(%arg0: i32) -> (i32, i32) {
    %c0_i32 = arith.constant 0 : i32
    %c0_i32_0 = arith.constant 0 : i32
    %c0_i32_1 = arith.constant 0 : i32
    return %c0_i32, %c0_i32_0 : i32, i32
  }
  func.func @transform_3(%arg0: i32) -> (i32, i32) {
    %c0_i32 = arith.constant 0 : i32
    %c0_i32_0 = arith.constant 0 : i32
    %c0_i32_1 = arith.constant 0 : i32
    return %c0_i32, %c0_i32_0 : i32, i32
  }
  func.func @transform_4(%arg0: i32) -> (i32, i32) {
    %c0_i32 = arith.constant 0 : i32
    %c0_i32_0 = arith.constant 0 : i32
    %c0_i32_1 = arith.constant 0 : i32
    return %c0_i32, %c0_i32_0 : i32, i32
  }
  func.func @transform_5(%arg0: i32) -> (i32, i32) {
    %c0_i32 = arith.constant 0 : i32
    %c0_i32_0 = arith.constant 0 : i32
    %c0_i32_1 = arith.constant 0 : i32
    return %c0_i32, %c0_i32_0 : i32, i32
  }
  func.func @transform_6(%arg0: i32) -> (i32, i32) {
    %c0_i32 = arith.constant 0 : i32
    %c0_i32_0 = arith.constant 0 : i32
    %c0_i32_1 = arith.constant 0 : i32
    return %c0_i32, %c0_i32_0 : i32, i32
  }
  func.func @transform_7(%arg0: i32) -> (i32, i32) {
    %c0_i32 = arith.constant 0 : i32
    %c0_i32_0 = arith.constant 0 : i32
    %c0_i32_1 = arith.constant 0 : i32
    return %c0_i32, %c0_i32_0 : i32, i32
  }
  func.func @transform_8(%arg0: i32) -> (i32, i32) {
    %c0_i32 = arith.constant 0 : i32
    %c0_i32_0 = arith.constant 0 : i32
    %c0_i32_1 = arith.constant 0 : i32
    return %c0_i32, %c0_i32_0 : i32, i32
  }
  func.func @transform_9(%arg0: i32) -> (i32, i32) {
    %c0_i32 = arith.constant 0 : i32
    %c0_i32_0 = arith.constant 0 : i32
    return %arg0, %c0_i32 : i32, i32
  }
}

</mosaic_0001>

<bundles_post_ra>
// kernel: tpu_custom_call.1
= control target key start
LH: loop header
LB: loop body
LE: loop exit
PB: predicated region body
PF: predicated region fallthrough
CT: control target
= control target key end

     0   :  { %14 = vsyncpa [#allocation3], 0  ;;  %s805_s0 = inlined_call_operand.vmem [shape: f32[8,3], index: 0, kind: input, shape index: {}]   ;;  %s806_s1 = inlined_call_operand.vmem [shape: f32[8,4], index: 1, kind: input, shape index: {}]   ;;  %s807_s2 = inlined_call_operand.vmem [shape: f32[3,128], index: 2, kind: input, shape index: {}]   ;;  %s808_s3 = inlined_call_operand.vmem [shape: f32[4,128], index: 3, kind: input, shape index: {}]   ;;  %s809_s4 = inlined_call_operand.vmem [shape: f32[1,128], index: 4, kind: input, shape index: {}]   ;;  %s810_s5 = inlined_call_operand.hbm [shape: bf16[128,128], index: 5, kind: input, shape index: {}]   ;;  %s811_s6 = inlined_call_operand.vmem [shape: f32[1,128], index: 6, kind: input, shape index: {}]   ;;  %s812_s7 = inlined_call_operand.hbm [shape: bf16[128,128], index: 7, kind: input, shape index: {}]   ;;  %s813_s8 = inlined_call_operand.vmem [shape: f32[1,128], index: 8, kind: input, shape index: {}]   ;;  %s814_s9 = inlined_call_operand.hbm [shape: bf16[8,12], index: 9, kind: output, shape index: {}]  }
   0x1   :  { %15 = vsyncpa [#allocation6], 0 }
   0x2   :  { %16 = vsyncpa [#allocation4], 0  ;;  %s665_s30 = smov [#allocation2]   ;;  %s593_s13 = scalar_lea.hbm %s810_s5, 1024 }
   0x3   :  { %s32_s10 = sshll.u32 %s665_s30, 4  ;;  %p594_p0 = scmp.ne.s32.totalorder %s810_s5, %s593_s13  ;;  %s33_s10 = int_to_ptr.vmem [resolvable:$true] %s32_s10 }
   0x4   :  { %p597_p1 = scmp.lt.u32.totalorder %s593_s13, %s810_s5 }
   0x6   :  { %p599_p2 = pnand %p597_p1, %p594_p0 }
   0x8   :  { %602 = shalt.err (!%p599_p2)
}
   0x9   :  { %s603_s18 = scalar_lea.vmem %s33_s10, 1024  ;;  %p608_p4 = scmp.lt.s32.totalorder %s33_s10, %s33_s10 }
   0xa   :  { %p604_p3 = scmp.ne.s32.totalorder %s33_s10, %s603_s18  ;;  %p609_p5 = scmp.lt.s32.totalorder %s603_s18, %s603_s18 }
   0xc   :  { %p610_p6 = por %p609_p5, %p608_p4 }
   0xe   :  { %p611_p7 = pnand %p610_p6, %p604_p3 }
  0x10   :  { %614 = shalt.err (!%p611_p7)
}
  0x11   :  { %s666_s19 = smov 64   ;;  %s667_s20 = smov 4  }
  0x12   :  { %38 = dma.hbm_to_vmem [thread:$0]  %s810_s5, 1024, %s33_s10, [#allocation3], %s666_s19, %s666_s19, %s667_s20  }
  0x13   :  { %s668_s23 = smov [#allocation5]   ;;  %s615_s27 = scalar_lea.hbm %s812_s7, 1024 }
  0x14   :  { %s46_s24 = sshll.u32 %s668_s23, 4  ;;  %p616_p8 = scmp.ne.s32.totalorder %s812_s7, %s615_s27  ;;  %s47_s24 = int_to_ptr.vmem [resolvable:$true] %s46_s24 }
  0x15   :  { %p619_p9 = scmp.lt.u32.totalorder %s615_s27, %s812_s7 }
  0x17   :  { %p621_p10 = pnand %p619_p9, %p616_p8 }
  0x19   :  { %624 = shalt.err (!%p621_p10)
}
  0x1a   :  { %s625_s12 = scalar_lea.vmem %s47_s24, 1024  ;;  %p630_p12 = scmp.lt.s32.totalorder %s47_s24, %s47_s24 }
  0x1b   :  { %p626_p11 = scmp.ne.s32.totalorder %s47_s24, %s625_s12  ;;  %p631_p13 = scmp.lt.s32.totalorder %s625_s12, %s625_s12 }
  0x1d   :  { %p632_p0 = por %p631_p13, %p630_p12 }
  0x1f   :  { %p633_p1 = pnand %p632_p0, %p626_p11 }
  0x21   :  { %636 = shalt.err (!%p633_p1)
}
  0x22   :  { %52 = dma.hbm_to_vmem [thread:$0]  %s812_s7, 1024, %s47_s24, [#allocation6], %s666_s19, %s666_s19, %s667_s20  }
  0x23   :  { %659 = dma.done.wait [#allocation3], 1024  }
  0x24   :  { %660 = vsyncadd [#allocation3], 4294966272 }
  0x25   :  { %661 = dma.done.wait [#allocation6], 1024  }
  0x26   :  { %662 = vsyncadd [#allocation6], 4294966272  ;;  %v669_v0 = vmov 0.0   ;;  %vm670_vm0 = vmmov 0   ;;  %vm70_vm1 = vcmask 1043456   ;;  %vm148_vm2 = vcmask 1042432  }
  0x27   :  { %520 = vmatprep.subr.mxu0 %v669_v0  ;;  %525 = vmatprep.subr.mxu1 %v669_v0  ;;  %vm66_vm3 = vcmask 31744   ;;  %vm144_vm4 = vcmask 23552   ;;  %v65_v1 = vld [vmem:[%s808_s3] sm:$0xf]  ;;  %v578_v6 = vld [vmem:[#allocation2 + $0x8] sm:$0xff]   ;;  %v579_v7 = vld [vmem:[#allocation2 + $0x10] sm:$0xff]  }
  0x28   :  { %522 = vmatprep.mubr.msk.f32.mxu0 %vm670_vm0, %v669_v0  ;;  %527 = vmatprep.mubr.msk.f32.mxu1 %vm670_vm0, %v669_v0  ;;  %v63_v2 = vld [vmem:[%s807_s2] sm:$0x7]  ;;  %v580_v8 = vld [vmem:[#allocation2 + $0x18] sm:$0xff]   ;;  %v582_v10 = vld [vmem:[#allocation2 + $0x28] sm:$0xff]   ;;  %s671_s21 = smov [#allocation7]   ;;  %vm457_vm5 = vcmask 93184  }
  0x29   :  { %v64_v3 = vld [vmem:[%s806_s1] sm:$0xff]  ;;  %521 = vmatpush3.msk.msra.mxu0 %vm70_vm1, %v65_v1  ;;  %526 = vmatpush3.msk.msra.mxu1 %vm148_vm2, %v63_v2  ;;  %v583_v11 = vld [vmem:[#allocation2 + $0x30] sm:$0xff]   ;;  %v584_v12 = vld [vmem:[#allocation2 + $0x38] sm:$0xff]   ;;  %s465_s22 = sshll.u32 %s671_s21, 4  ;;  %s466_s22 = int_to_ptr.vmem [resolvable:$true] %s465_s22 }
  0x2a   :  { %v62_v4 = vld [vmem:[%s805_s0] sm:$0xff]  ;;  %523 = vmatmul.mubr.msk.f32.vlgmr.msra.gmra.mrb[0].mxu0 %vm66_vm3, %v64_v3  ;;  %530 = vmatprep.subr.bf16.mxu0 %v669_v0  ;;  %v586_v14 = vld [vmem:[#allocation5 + $0x8] sm:$0xff]   ;;  %v587_v15 = vld [vmem:[#allocation5 + $0x10] sm:$0xff]   ;;  %p642_p3 = scmp.lt.s32.totalorder %s466_s22, %s466_s22 }
  0x2b   :  { %528 = vmatmul.mubr.msk.f32.vlgmr.msra.gmra.mrb[0].mxu1 %vm144_vm4, %v62_v4  ;;  %v577_v5 = vld [vmem:[#allocation2] sm:$0xff]   ;;  %546 = vmatprep.mubr.msk.bf16.mxu0 %vm670_vm0, %v669_v0  ;;  %v588_v16 = vld [vmem:[#allocation5 + $0x18] sm:$0xff]   ;;  %v590_v18 = vld [vmem:[#allocation5 + $0x28] sm:$0xff]  }
  0x2c   :  { %531 = vmatpush3.bf16.msra.mxu0 %v577_v5  ;;  %550 = vmatprep.subr.bf16.mxu1 %v669_v0  ;;  %v581_v9 = vld [vmem:[#allocation2 + $0x20] sm:$0xff]   ;;  %v591_v28 = vld [vmem:[#allocation5 + $0x30] sm:$0xff]   ;;  %v592_v29 = vld [vmem:[#allocation5 + $0x38] sm:$0xff]  }
  0x2d   :  { %532 = vmatprep.subr.bf16.mxu0 %v669_v0  ;;  %566 = vmatprep.mubr.msk.bf16.mxu1 %vm670_vm0, %v669_v0  ;;  %v585_v13 = vld [vmem:[#allocation5] sm:$0xff]  }
  0x2e   :  { %551 = vmatpush3.bf16.msra.mxu1 %v585_v13  ;;  %v589_v17 = vld [vmem:[#allocation5 + $0x20] sm:$0xff]  }
  0x2f   :  { %552 = vmatprep.subr.bf16.mxu1 %v669_v0  ;;  %v479_v21 = vld [vmem:[%s809_s4] ss:$0 sm:$0xff] }
  0x30   :  { %533 = vmatpush3.bf16.msra.mxu0 %v578_v6  ;;  %v480_v30 = vld [vmem:[%s811_s6] ss:$0 sm:$0xff]  ;;  %s637_s6 = scalar_lea.vmem %s466_s22, 64 }
  0x31   :  { %534 = vmatprep.subr.bf16.mxu0 %v669_v0  ;;  %v489_v38 = vld [vmem:[%s813_s8] ss:$0 sm:$0xff]  ;;  %p638_p2 = scmp.ne.s32.totalorder %s466_s22, %s637_s6  ;;  %p643_p4 = scmp.lt.s32.totalorder %s637_s6, %s637_s6 }
  0x32   :  { %553 = vmatpush3.bf16.msra.mxu1 %v586_v14 }
  0x33   :  { %554 = vmatprep.subr.bf16.mxu1 %v669_v0  ;;  %p644_p5 = por %p643_p4, %p642_p3 }
  0x34   :  { %535 = vmatpush3.bf16.msra.mxu0 %v579_v7 }
  0x35   :  { %536 = vmatprep.subr.bf16.mxu0 %v669_v0  ;;  %p645_p6 = pnand %p644_p5, %p638_p2 }
  0x36   :  { %555 = vmatpush3.bf16.msra.mxu1 %v587_v15 }
  0x37   :  { %556 = vmatprep.subr.bf16.mxu1 %v669_v0 }
  0x38   :  { %537 = vmatpush3.bf16.msra.mxu0 %v580_v8 }
  0x39   :  { %538 = vmatprep.subr.bf16.mxu0 %v669_v0 }
  0x3a   :  { %557 = vmatpush3.bf16.msra.mxu1 %v588_v16 }
  0x3b   :  { %558 = vmatprep.subr.bf16.mxu1 %v669_v0 }
  0x3c   :  { %539 = vmatpush3.bf16.msra.mxu0 %v581_v9 }
  0x3d   :  { %540 = vmatprep.subr.bf16.mxu0 %v669_v0 }
  0x3e   :  { %559 = vmatpush3.bf16.msra.mxu1 %v589_v17 }
  0x3f   :  { %560 = vmatprep.subr.bf16.mxu1 %v669_v0 }
  0x40   :  { %541 = vmatpush3.bf16.msra.mxu0 %v582_v10 }
  0x41   :  { %542 = vmatprep.subr.bf16.mxu0 %v669_v0 }
  0x42   :  { %561 = vmatpush3.bf16.msra.mxu1 %v590_v18 }
  0x43   :  { %562 = vmatprep.subr.bf16.mxu1 %v669_v0 }
  0x44   :  { %543 = vmatpush3.bf16.msra.mxu0 %v583_v11 }
  0x45   :  { %544 = vmatprep.subr.bf16.mxu0 %v669_v0 }
  0x46   :  { %563 = vmatpush3.bf16.msra.mxu1 %v591_v28 }
  0x47   :  { %564 = vmatprep.subr.bf16.mxu1 %v669_v0 }
  0x48   :  { %545 = vmatpush3.bf16.msra.mxu0 %v584_v12 }
  0x4a   :  { %565 = vmatpush3.bf16.msra.mxu1 %v592_v29 }
  0xfd   :  { %v140_v19 = vpop.f32.mrb[0].mxu0 }
  0xfe   :  { %v218_v20 = vpop.f32.mrb[0].mxu1  ;;  %v524_v23 = vpop.f32.mrb[1].mxu0 }
  0xff   :  { %v219_v22 = vadd.f32 %v218_v20, %v140_v19  ;;  %v529_v24 = vpop.f32.mrb[1].mxu1 }
 0x101   :  { %v229_v25 = vadd.f32 %v479_v21, %v219_v22 }
 0x103   :  { %v230_v26 = vmax.f32 %v229_v25, 0.0 }
 0x105   :  { %v231_v27 = vpack.c.bf16 %v230_v26, %v230_v26 }
 0x107   :  { %547 = vmatmul.mubr.bf16.vlgmr.msra.gmra.mrb[4].mxu0 %v231_v27 }
 0x1da   :  { %v337_v31 = vpop.f32.mrb[4].mxu0 }
 0x1db   :  { %v338_v32 = vadd.f32 %v480_v30, %v337_v31  ;;  %v548_v33 = vpop.f32.mrb[5].mxu0 }
 0x1dc   :  { %v340_v34 = vpop.f32.mrb[6].mxu0 }
 0x1dd   :  { %v343_v35 = vmax.f32 %v338_v32, 0.0  ;;  %v549_v36 = vpop.f32.mrb[7].mxu0 }
 0x1df   :  { %v344_v37 = vpack.c.bf16 %v343_v35, %v343_v35 }
 0x1e1   :  { %567 = vmatmul.mubr.bf16.vlgmr.msra.gmra.mrb[4].mxu1 %v344_v37 }
 0x2b4   :  { %v450_v39 = vpop.f32.mrb[4].mxu1 }
 0x2b5   :  { %v451_v40 = vadd.f32 %v489_v38, %v450_v39  ;;  %v568_v41 = vpop.f32.mrb[5].mxu1 }
 0x2b6   :  { %v453_v42 = vpop.f32.mrb[6].mxu1 }
 0x2b7   :  { %v456_v43 = vpack.c.bf16 %v451_v40, %v451_v40  ;;  %v569_v44 = vpop.f32.mrb[7].mxu1 }
 0x2b9   :  { %458 = vst.msk [vmem:[#allocation7] sm:$0xf] %vm457_vm5, %v456_v43 }
 0x2ba   :  { %648 = shalt.err (!%p645_p6)
}
 0x2bb   :  { %s649_s24 = scalar_lea.hbm %s814_s9, 64 }
 0x2bc   :  { %p650_p7 = scmp.ne.s32.totalorder %s814_s9, %s649_s24  ;;  %p653_p8 = scmp.lt.u32.totalorder %s649_s24, %s814_s9 }
 0x2be   :  { %p655_p9 = pnand %p653_p8, %p650_p7 }
 0x2c0   :  { %658 = shalt.err (!%p655_p9)
}
 0x2c1   :  { %468 = dma.vmem_to_hbm [thread:$0]  %s466_s22, 64, %s814_s9, [#allocation4]  }
 0x2c2   :  { %663 = dma.done.wait [#allocation4], 64  }
 0x2c3   :  { %664 = vsyncadd [#allocation4], 4294967232 }
 0x2c4   :  { %472 = vsyncpa [#allocation3], 1 }
 0x2c5   :  { %473 = vsyncpa [#allocation6], 1 }
 0x2c6   :  { %474 = vsyncpa [#allocation4], 1 }

</bundles_post_ra>
